<compile_context>
chip_gen: v5e
topology: v5e:2x2
jax: 0.10.0
libtpu: 0.0.40
codegen_flags: <defaults>
</compile_context>

<pallas_src>
import functools

import jax
import jax.numpy as jnp
from jax import lax
from jax.experimental import pallas as pl
from jax.experimental.pallas import tpu as pltpu


def _round_up(x, m):
    return ((x + m - 1) // m) * m


# --------------------------------------------------------------------------- #
# Resident-W fixed-point solver: one pallas_call for the whole while-loop.
# --------------------------------------------------------------------------- #
def _solver_kernel(params_ref, wt_ref, bias_ref,          # inputs
                   z_ref, it_ref, err_out_ref,             # outputs
                   err_v, alpha_v, it_s,                    # scratch
                   *, max_iter):
    """Damped fixed-point loop with W.T / bias / z resident in VMEM.

    zn = relu((1 - a) * z + a * (z @ W.T + bias)); stop when the inf-norm step
    error <= tol or after max_iter steps.  A NaN error also stops the loop
    because `NaN > tol` is False (matching the reference's np.isnan check).
    """
    tol = params_ref[1]

    # init: z = 0, err = 1.0, alpha = alpha0, it = 0
    z_ref[...] = jnp.zeros_like(z_ref)
    err_v[...] = jnp.full((1, 1), 1.0, jnp.float32)
    alpha_v[...] = jnp.full((1, 1), params_ref[0], jnp.float32)
    it_s[0] = 0

    def body(step, carry):
        prev_err = err_v[0, 0]

        @pl.when(prev_err > tol)          # False once converged (or NaN)
        def _iterate():
            a2d = alpha_v[...]            # (1,1), broadcasts over (Bp, H)
            prev2d = err_v[...]
            z = z_ref[...]
            # MXU matmul: LHS cast to the resident-W dtype (f32 or bf16),
            # accumulation always in f32.
            wz = jnp.dot(z.astype(wt_ref.dtype), wt_ref[...],
                         preferred_element_type=jnp.float32)
            zn = jnp.maximum((1.0 - a2d) * z + a2d * (wz + bias_ref[...]), 0.0)
            # inf-norm step error (padded rows are exactly zero on both sides)
            diff = jnp.abs(zn - z)
            err2d = jnp.max(jnp.max(diff, axis=1, keepdims=True),
                            axis=0, keepdims=True)                   # (1, 1)
            z_ref[...] = zn
            alpha_v[...] = jnp.where(err2d > prev2d,
                                     jnp.maximum(a2d * 0.1, 1e-6), a2d)
            err_v[...] = err2d
            it_s[0] = it_s[0] + 1

        return carry

    lax.fori_loop(0, max_iter, body, 0)

    it_ref[0] = it_s[0]
    err_out_ref[...] = err_v[...]


def _fixed_point_solve(params, wt, bias, max_iter):
    """params: (2,) f32 [alpha0, tol] in SMEM; wt = W.T (H,H); bias (Bp,H)."""
    bp, h = bias.shape
    # resident working set: W.T + bias + z (plus a few vregs of temporaries)
    resident = wt.size * wt.dtype.itemsize + 2 * bias.size * 4
    if resident > (40 << 20):
        # TODO(synk): panelize W via pltpu.emit_pipeline / bf16-resident copy
        # once the working set exceeds the v7x 64 MiB VMEM budget.
        raise NotImplementedError(
            "resident-W working set too large for VMEM; needs panelization")
    vmem_limit = int(min(max(4 * resident + (4 << 20), 16 << 20), 56 << 20))

    kernel = functools.partial(_solver_kernel, max_iter=int(max_iter))
    return pl.pallas_call(
        kernel,
        out_shape=(jax.ShapeDtypeStruct((bp, h), jnp.float32),   # converged z
                   jax.ShapeDtypeStruct((1,), jnp.int32),        # iterations
                   jax.ShapeDtypeStruct((1, 1), jnp.float32)),   # final err
        in_specs=[
            pl.BlockSpec(memory_space=pltpu.MemorySpace.SMEM),   # [alpha, tol]
            pl.BlockSpec(memory_space=pltpu.MemorySpace.VMEM),   # W.T resident
            pl.BlockSpec(memory_space=pltpu.MemorySpace.VMEM),   # bias resident
        ],
        out_specs=(
            pl.BlockSpec(memory_space=pltpu.MemorySpace.VMEM),   # z
            pl.BlockSpec(memory_space=pltpu.MemorySpace.SMEM),   # it
            pl.BlockSpec(memory_space=pltpu.MemorySpace.VMEM),   # err
        ),
        scratch_shapes=[pltpu.VMEM((1, 1), jnp.float32),   # current err
                        pltpu.VMEM((1, 1), jnp.float32),   # adaptive alpha
                        pltpu.SMEM((1,), jnp.int32)],      # iteration counter
        compiler_params=pltpu.CompilerParams(vmem_limit_bytes=vmem_limit),
    )(params, wt, bias)


# ------------------------------------------------------ whole solve (on-dev) -
@functools.partial(jax.jit, static_argnames=("max_iter", "compute_dtype"))
def _forward_impl(x, wt, u, b, alpha, tol, max_iter, compute_dtype):
    bsz = x.shape[0]
    # bias = lin_module.bias(x) = x @ U.T + b, kept in f32
    bias = (jnp.dot(x, u.T, preferred_element_type=jnp.float32)
            + b[None, :].astype(jnp.float32))

    # pad batch to a sublane multiple only; padded rows (bias = 0) stay exactly
    # 0 throughout the iteration and contribute 0 to the inf-norm error.
    bp = _round_up(max(bsz, 1), 8)
    bias_p = jnp.pad(bias, ((0, bp - bsz), (0, 0)))
    wt32 = wt.astype(jnp.float32)
    params = jnp.stack([alpha.astype(jnp.float32), tol.astype(jnp.float32)])

    z, it, err = _fixed_point_solve(params, wt32.astype(compute_dtype),
                                    bias_p, max_iter)

    # Final step (Backward.apply is identity in the forward pass):
    # zn = relu(z @ W.T + bias), always in f32 regardless of the in-loop dtype.
    zc = z[:bsz]
    zn = jnp.maximum(
        jnp.dot(zc, wt32, preferred_element_type=jnp.float32) + bias, 0.0)
    return zn, it[0], err[0, 0]


class ForwardBackwardPallas:
    """Forward pass of FixedPointSolver (ForwardBackward splitting) on TPU."""

    def __init__(self, W, U, b, alpha=1.0, fp_tol=1e-5, max_iter=300,
                 update_alpha=False, alpha_factor=1, verbose=False,
                 record=False, mxu_dtype=None):
        self.W = jnp.asarray(W, jnp.float32)
        self.Wt = self.W.T
        self.U = jnp.asarray(U, jnp.float32)
        self.b = jnp.asarray(b, jnp.float32)
        self.alpha = float(alpha)
        self.tol = float(fp_tol)
        self.max_iter = int(max_iter)
        self.update_alpha = update_alpha
        self.alpha_factor = alpha_factor
        self.verbose = verbose
        self.record = record
        # bf16 MXU inputs (f32 accumulation) only when the tolerance tolerates
        # the ~1e-3 shift of the converged fixed point; the final step is
        # always computed in f32.
        if mxu_dtype is None:
            mxu_dtype = jnp.bfloat16 if self.tol >= 1e-3 else jnp.float32
        self.mxu_dtype = mxu_dtype
        self.frd_itr = 0
        self.final_err = None

    def forward(self, x):
        zn, it, err = _forward_impl(
            jnp.asarray(x, jnp.float32), self.Wt, self.U, self.b,
            jnp.float32(self.alpha), jnp.float32(self.tol),
            self.max_iter, self.mxu_dtype)
        # single host read AFTER the fully on-device solve
        self.frd_itr = int(it)
        self.final_err = float(err)
        if self.record:
            print('Forward:', self.frd_itr - 1, self.final_err,
                  'Converged' if self.frd_itr < self.max_iter
                  else 'Not Converged')
        # TODO(synk): the per-iteration `resid`/`conv` bookkeeping of the
        # reference (an extra relu(zn@W.T+bias) pass per iteration) is
        # logging-only and is omitted here.
        return zn

    __call__ = forward


# ---------------------------------------------------------- pure-jnp reference
def _reference_forward(x, W, U, b, alpha=1.0, tol=1e-5, max_iter=300):
    """Host-controlled loop mirroring the PyTorch control flow exactly."""
    bias = x @ U.T + b[None, :]
    z = jnp.zeros((x.shape[0], W.shape[0]), jnp.float32)
    err, it, it_alpha = 1.0, 0, alpha
    while err > tol and it < max_iter and not (err != err):
        zn = jnp.maximum((1.0 - it_alpha) * z + it_alpha * (z @ W.T + bias), 0.0)
        new_err = float(jnp.max(jnp.abs(zn - z)))
        if new_err > err:
            it_alpha = max(it_alpha / 10.0, 1e-6)
        err = new_err
        z = zn
        it += 1
    return jnp.maximum(z @ W.T + bias, 0.0), it


# ------------------------------------------------------------------- main ----
if __name__ == "__main__":
    B, D_in, H = 2, 16, 32
    key = jax.random.PRNGKey(0)
    kW, kU, kb, kx, kx2 = jax.random.split(key, 5)

    # deterministic synthetic parameters; W scaled so the map is contractive
    W = 0.3 * jax.random.normal(kW, (H, H), jnp.float32) / jnp.sqrt(H)
    U = jax.random.normal(kU, (H, D_in), jnp.float32) / jnp.sqrt(D_in)
    b = 0.1 * jax.random.normal(kb, (H,), jnp.float32)
    x = 0.3 * jax.random.normal(kx, (B, D_in), jnp.float32)
    x2 = 0.3 * jax.random.normal(kx2, (5, D_in), jnp.float32)   # odd batch

    # --- case 1: f32 path, tight tolerance ----------------------------------
    solver = ForwardBackwardPallas(W, U, b, alpha=1.0, fp_tol=1e-5,
                                   max_iter=300)
    out = jax.block_until_ready(solver.forward(x))
    out_ref, _ = _reference_forward(x, W, U, b, 1.0, 1e-5, 300)
    assert out.shape == (B, H)
    assert bool(jnp.all(jnp.isfinite(out)))
    assert jnp.allclose(out, out_ref, atol=2e-4), "case1 output mismatch"
    assert solver.frd_itr < 300, "case1 did not converge"

    # --- case 2: f32 path, batch padding (5 -> 8) and damping alpha < 1 -----
    solver2 = ForwardBackwardPallas(W, U, b, alpha=0.7, fp_tol=1e-5,
                                    max_iter=300)
    out2 = jax.block_until_ready(solver2.forward(x2))
    out2_ref, _ = _reference_forward(x2, W, U, b, 0.7, 1e-5, 300)
    assert out2.shape == (5, H)
    assert jnp.allclose(out2, out2_ref, atol=2e-4), "case2 output mismatch"
    assert solver2.frd_itr < 300, "case2 did not converge"

    # --- case 3: bf16 MXU path (loose tolerance), f32 final step ------------
    solver3 = ForwardBackwardPallas(W, U, b, alpha=1.0, fp_tol=5e-3,
                                    max_iter=300)
    assert solver3.mxu_dtype == jnp.bfloat16
    out3 = jax.block_until_ready(solver3.forward(x2))
    # the fixed point is alpha-independent, so the tight f32 reference from
    # case 2 is the accurate answer to compare against (loose tolerance here)
    assert bool(jnp.all(jnp.isfinite(out3)))
    assert jnp.allclose(out3, out2_ref, atol=5e-2), "case3 output mismatch"
    assert solver3.frd_itr < 300, "case3 did not converge"

    print("KERNEL_OK")
</pallas_src>

<mosaic_0001>
module attributes {stable_mosaic.version = 11 : i64} {
  func.func @_solver_kernel(%arg0: memref<2xf32, #tpu.memory_space<smem>>, %arg1: memref<32x32xf32, #tpu.memory_space<vmem>>, %arg2: memref<8x32xf32, #tpu.memory_space<vmem>>, %arg3: memref<8x32xf32, #tpu.memory_space<vmem>>, %arg4: memref<1xi32, #tpu.memory_space<smem>>, %arg5: memref<1x1xf32, #tpu.memory_space<vmem>>, %arg6: memref<1x1xf32, #tpu.memory_space<vmem>>, %arg7: memref<1x1xf32, #tpu.memory_space<vmem>>, %arg8: memref<1xi32, #tpu.memory_space<smem>>) attributes {dimension_semantics = [], scalar_prefetch = 0 : i64, scratch_operands = 3 : i64, tpu.core_type = #tpu.core_type<tc>} {
    %c1 = arith.constant 1 : index
    %0 = memref.load %arg0[%c1] : memref<2xf32, #tpu.memory_space<smem>>
    %cst = arith.constant 0.000000e+00 : f32
    %1 = vector.broadcast %cst : f32 to vector<8x32xf32>
    %c0 = arith.constant 0 : index
    %c0_0 = arith.constant 0 : index
    %2 = vector.load %arg3[%c0, %c0_0] : memref<8x32xf32, #tpu.memory_space<vmem>>, vector<8x32xf32>
    tpu.vector_store %arg3[%c0, %c0_0], %1 {strides = array<i32>} : memref<8x32xf32, #tpu.memory_space<vmem>>, vector<8x32xf32>,
    %cst_1 = arith.constant 1.000000e+00 : f32
    %3 = vector.broadcast %cst_1 : f32 to vector<1x1xf32>
    %c0_2 = arith.constant 0 : index
    %c0_3 = arith.constant 0 : index
    %4 = vector.load %arg6[%c0_2, %c0_3] : memref<1x1xf32, #tpu.memory_space<vmem>>, vector<1x1xf32>
    tpu.vector_store %arg6[%c0_2, %c0_3], %3 {strides = array<i32>} : memref<1x1xf32, #tpu.memory_space<vmem>>, vector<1x1xf32>,
    %c0_4 = arith.constant 0 : index
    %5 = memref.load %arg0[%c0_4] : memref<2xf32, #tpu.memory_space<smem>>
    %6 = vector.broadcast %5 : f32 to vector<1x1xf32>
    %c0_5 = arith.constant 0 : index
    %c0_6 = arith.constant 0 : index
    %7 = vector.load %arg7[%c0_5, %c0_6] : memref<1x1xf32, #tpu.memory_space<vmem>>, vector<1x1xf32>
    tpu.vector_store %arg7[%c0_5, %c0_6], %6 {strides = array<i32>} : memref<1x1xf32, #tpu.memory_space<vmem>>, vector<1x1xf32>,
    %c0_i32 = arith.constant 0 : i32
    %c0_7 = arith.constant 0 : index
    %8 = memref.load %arg8[%c0_7] : memref<1xi32, #tpu.memory_space<smem>>
    memref.store %c0_i32, %arg8[%c0_7] : memref<1xi32, #tpu.memory_space<smem>>
    %c0_i32_8 = arith.constant 0 : i32
    %c300_i32 = arith.constant 300 : i32
    %9 = arith.addi %c0_i32_8, %c300_i32 : i32
    %c1_i32 = arith.constant 1 : i32
    scf.for %arg9 = %c0_i32_8 to %9 step %c1_i32  : i32 {
      %c0_15 = arith.constant 0 : index
      %c0_16 = arith.constant 0 : index
      %14 = vector.load %arg6[%c0_15, %c0_16] : memref<1x1xf32, #tpu.memory_space<vmem>>, vector<1x1xf32>
      %15 = vector.extract %14[0, 0] : f32 from vector<1x1xf32>
      %16 = arith.cmpf ogt, %15, %0 : f32
      %17 = arith.extui %16 : i1 to i32
      %c0_i32_17 = arith.constant 0 : i32
      %18 = arith.cmpi ne, %17, %c0_i32_17 : i32
      scf.if %18 {
        %c0_18 = arith.constant 0 : index
        %c0_19 = arith.constant 0 : index
        %19 = vector.load %arg7[%c0_18, %c0_19] : memref<1x1xf32, #tpu.memory_space<vmem>>, vector<1x1xf32>
        %c0_20 = arith.constant 0 : index
        %c0_21 = arith.constant 0 : index
        %20 = vector.load %arg6[%c0_20, %c0_21] : memref<1x1xf32, #tpu.memory_space<vmem>>, vector<1x1xf32>
        %c0_22 = arith.constant 0 : index
        %c0_23 = arith.constant 0 : index
        %21 = vector.load %arg3[%c0_22, %c0_23] : memref<8x32xf32, #tpu.memory_space<vmem>>, vector<8x32xf32>
        %c0_24 = arith.constant 0 : index
        %c0_25 = arith.constant 0 : index
        %22 = vector.load %arg1[%c0_24, %c0_25] : memref<32x32xf32, #tpu.memory_space<vmem>>, vector<32x32xf32>
        %cst_26 = arith.constant dense<0.000000e+00> : vector<8x32xf32>
        %23 = tpu.matmul %21, %22, %cst_26 {dimension_numbers = #tpu.dot_dimension_numbers<[1], [0], [0], [1], [0, 0, 1, 1], [], []>} : vector<8x32xf32>, vector<32x32xf32>, vector<8x32xf32> -> vector<8x32xf32>
        %cst_27 = arith.constant 1.000000e+00 : f32
        %24 = vector.broadcast %cst_27 : f32 to vector<1x1xf32>
        %25 = arith.subf %24, %19 : vector<1x1xf32>
        %26 = vector.broadcast %25 : vector<1x1xf32> to vector<8x32xf32>
        %27 = arith.mulf %26, %21 : vector<8x32xf32>
        %c0_28 = arith.constant 0 : index
        %c0_29 = arith.constant 0 : index
        %28 = vector.load %arg2[%c0_28, %c0_29] : memref<8x32xf32, #tpu.memory_space<vmem>>, vector<8x32xf32>
        %29 = arith.addf %23, %28 : vector<8x32xf32>
        %30 = vector.broadcast %19 : vector<1x1xf32> to vector<8x32xf32>
        %31 = arith.mulf %30, %29 : vector<8x32xf32>
        %32 = arith.addf %27, %31 : vector<8x32xf32>
        %cst_30 = arith.constant 0.000000e+00 : f32
        %33 = vector.broadcast %cst_30 : f32 to vector<8x32xf32>
        %34 = arith.maximumf %32, %33 : vector<8x32xf32>
        %35 = arith.subf %34, %21 : vector<8x32xf32>
        %36 = math.absf %35 : vector<8x32xf32>
        %cst_31 = arith.constant dense<0xFF800000> : vector<8xf32>
        %37 = vector.multi_reduction <maximumf>, %36, %cst_31 [1] : vector<8x32xf32> to vector<8xf32>
        %38 = vector.shape_cast %37 : vector<8xf32> to vector<8x1xf32>
        %cst_32 = arith.constant dense<0xFF800000> : vector<1xf32>
        %39 = vector.multi_reduction <maximumf>, %38, %cst_32 [0] : vector<8x1xf32> to vector<1xf32>
        %40 = vector.shape_cast %39 : vector<1xf32> to vector<1x1xf32>
        %c0_33 = arith.constant 0 : index
        %c0_34 = arith.constant 0 : index
        %41 = vector.load %arg3[%c0_33, %c0_34] : memref<8x32xf32, #tpu.memory_space<vmem>>, vector<8x32xf32>
        tpu.vector_store %arg3[%c0_33, %c0_34], %34 {strides = array<i32>} : memref<8x32xf32, #tpu.memory_space<vmem>>, vector<8x32xf32>,
        %42 = arith.cmpf ogt, %40, %20 : vector<1x1xf32>
        %cst_35 = arith.constant 1.000000e-01 : f32
        %43 = vector.broadcast %cst_35 : f32 to vector<1x1xf32>
        %44 = arith.mulf %19, %43 : vector<1x1xf32>
        %cst_36 = arith.constant 9.99999997E-7 : f32
        %45 = vector.broadcast %cst_36 : f32 to vector<1x1xf32>
        %46 = arith.maximumf %44, %45 : vector<1x1xf32>
        %47 = arith.select %42, %46, %19 : vector<1x1xi1>, vector<1x1xf32>
        %c0_37 = arith.constant 0 : index
        %c0_38 = arith.constant 0 : index
        %48 = vector.load %arg7[%c0_37, %c0_38] : memref<1x1xf32, #tpu.memory_space<vmem>>, vector<1x1xf32>
        tpu.vector_store %arg7[%c0_37, %c0_38], %47 {strides = array<i32>} : memref<1x1xf32, #tpu.memory_space<vmem>>, vector<1x1xf32>,
        %c0_39 = arith.constant 0 : index
        %c0_40 = arith.constant 0 : index
        %49 = vector.load %arg6[%c0_39, %c0_40] : memref<1x1xf32, #tpu.memory_space<vmem>>, vector<1x1xf32>
        tpu.vector_store %arg6[%c0_39, %c0_40], %40 {strides = array<i32>} : memref<1x1xf32, #tpu.memory_space<vmem>>, vector<1x1xf32>,
        %c0_41 = arith.constant 0 : index
        %50 = memref.load %arg8[%c0_41] : memref<1xi32, #tpu.memory_space<smem>>
        %c1_i32_42 = arith.constant 1 : i32
        %51 = arith.addi %50, %c1_i32_42 : i32
        %c0_43 = arith.constant 0 : index
        %52 = memref.load %arg8[%c0_43] : memref<1xi32, #tpu.memory_space<smem>>
        memref.store %51, %arg8[%c0_43] : memref<1xi32, #tpu.memory_space<smem>>
      } else {
      }
    }
    %c0_9 = arith.constant 0 : index
    %10 = memref.load %arg8[%c0_9] : memref<1xi32, #tpu.memory_space<smem>>
    %c0_10 = arith.constant 0 : index
    %11 = memref.load %arg4[%c0_10] : memref<1xi32, #tpu.memory_space<smem>>
    memref.store %10, %arg4[%c0_10] : memref<1xi32, #tpu.memory_space<smem>>
    %c0_11 = arith.constant 0 : index
    %c0_12 = arith.constant 0 : index
    %12 = vector.load %arg6[%c0_11, %c0_12] : memref<1x1xf32, #tpu.memory_space<vmem>>, vector<1x1xf32>
    %c0_13 = arith.constant 0 : index
    %c0_14 = arith.constant 0 : index
    %13 = vector.load %arg5[%c0_13, %c0_14] : memref<1x1xf32, #tpu.memory_space<vmem>>, vector<1x1xf32>
    tpu.vector_store %arg5[%c0_13, %c0_14], %12 {strides = array<i32>} : memref<1x1xf32, #tpu.memory_space<vmem>>, vector<1x1xf32>,
    return
  }
}

</mosaic_0001>

<bundles_post_ra>
// kernel: _forward_impl.1
= control target key start
LH: loop header
LB: loop body
LE: loop exit
PB: predicated region body
PF: predicated region fallthrough
CT: control target
= control target key end

     0   :  { %11 = vsyncpa [#allocation8], 0  ;;  %s342_s0 = inlined_call_operand.vmem [shape: f32[2], index: 0, kind: input, shape index: {}]   ;;  %s343_s1 = inlined_call_operand.vmem [shape: f32[32,32], index: 1, kind: input, shape index: {}]   ;;  %s344_s2 = inlined_call_operand.vmem [shape: f32[8,32], index: 2, kind: input, shape index: {}]   ;;  %s345_s3 = inlined_call_operand.vmem [shape: f32[8,32], index: 3, kind: output, shape index: {0}]   ;;  %s346_s4 = inlined_call_operand.hbm [shape: s32[1], index: 4, kind: output, shape index: {1}]   ;;  %s347_s5 = inlined_call_operand.hbm [shape: f32[1,1], index: 5, kind: output, shape index: {2}]  }
   0x1   :  { %12 = vsyncpa [#allocation7], 0 }
   0x2   :  { %13 = vsyncpa [#allocation6], 0  ;;  %s19_s20 = sshll.u32 %s342_s0, 4  ;;  %s252_s21 = smov [#allocation5]   ;;  %s20_s20 = int_to_ptr.vmem [resolvable:$true] %s19_s20 }
   0x3   :  { %22 = dma.vmem_to_smem %s20_s20, 16, %s252_s21, [#allocation8]  }
   0x4   :  { %242 = dma.done.wait [#allocation8], 16  }
   0x5   :  { %243 = vsyncadd [#allocation8], 4294967280 }
   0x6   :  { %31 = sfence }
   0x7   :  { %s292_s22 = sld [smem:[#allocation5 + $0x1]]  ;;  %vm33_vm0 = vcmask 261120   ;;  %vm35_vm1 = vcmask 0   ;;  %v253_v0 = vmov 0.0   ;;  %v254_v1 = vmov 1.0   ;;  %s255_s0 = smov 0  }
   0x8   :  { %34 = vst.msk [vmem:[%s345_s3] sm:$0xff] %vm33_vm0, %v253_v0  ;;  %s37_s25 = sld [smem:[#allocation5]]  ;;  %s300_s26 = smov 0  }
   0x9   :  { %36 = vst.msk [vmem:[#allocation2] sm:$0x1] %vm35_vm1, %v254_v1  ;;  %41 = sst [smem:[#allocation4]] %s255_s0 }
   0xe   :  { %v38_v2 = vstv %s37_s25 }
   0xf   :  { %39 = vst.msk [vmem:[#allocation3] sm:$0x1] %vm35_vm1, %v38_v2 }
  0x10 LB: > { %v48_v3 = vld [vmem:[#allocation2] sm:$0x1]  ;;  %s250_s26 = sphi %s300_s26, %s47_s26  }
  0x11   : > { %171 = vpush %v48_v3 }
  0x42   : > { %s172_s27 = spop %171 }
  0x43   : > { %p50_p0 = scmp.gt.f32.partialorder %s172_s27, %s292_s22 }
  0x44   : > { %v60_v4 = vld [vmem:[%s343_s1 + $0x18] sm:$0xff] (%p50_p0)  ;;  %v59_v5 = vld [vmem:[%s343_s1 + $0x10] sm:$0xff] (%p50_p0)  ;;  %v256_v6 = vmov (%p50_p0), 0   ;;  %v54_v7 = vld [vmem:[#allocation3] sm:$0x1] (%p50_p0)  ;;  %s120_s17 = sld [smem:[#allocation4]] (%p50_p0) }
  0x45   : > { %53 = sbr.rel (!%p50_p0) target bundleno = 346 (0x15a), region = 28  ;;  %85 = vmatpush.msra.mxu0 (%p50_p0), %v60_v4  ;;  %188 = vset.pattern.permute.xlu0 (%p50_p0), %v256_v6  ;;  %v58_v8 = vld [vmem:[%s343_s1 + $0x8] sm:$0xff] (%p50_p0)  ;;  %v61_v9 = vsub.f32 (%p50_p0), 1.0, %v54_v7  ;;  %v57_v11 = vld [vmem:[%s343_s1] sm:$0xff] (%p50_p0)  ;;  %v115_v30 = vmul.f32 (%p50_p0), 0.1, %v54_v7 }
  0x46   : > { %v56_v12 = vld [vmem:[%s345_s3] sm:$0xff] (%p50_p0) }
  0x47   : > { %86 = vmatpush.msra.mxu0 (%p50_p0), %v59_v5  ;;  %v63_v10 = vperm.slane (%p50_p0), %v61_v9, 0  ;;  %v189_v13 = vld [vmem:[#allocation3] ss:$0 sm:$0xff] (%p50_p0)  ;;  %v55_v33 = vld [vmem:[#allocation2] sm:$0x1] (%p50_p0) }
  0x48   : > { %v69_v15 = vld [vmem:[%s344_s2] sm:$0xff] (%p50_p0)  ;;  %v116_v34 = vmax.f32 (%p50_p0), %v115_v30, 1e-06 }
  0x49   : > { %87 = vmatpush.msra.mxu0 (%p50_p0), %v58_v8  ;;  %65 = vperm.xlu0 (%p50_p0), %188, %v63_v10  }
  0x4a   : > { %s121_s18 = sadd.s32 1, %s120_s17 }
  0x4b   : > { %88 = vmatpush.msra.mxu0 %v57_v11  ;;  %122 = sst [smem:[#allocation4]] %s121_s18 }
  0x4c   : > { %170 = vmatmul.msk.f32.vlgmr.msra.gmra.mxu0 %vm33_vm0, %v56_v12 }
  0x51   : > { %96 = vperm.xlu0 %188, %v189_v13  }
  0xbb   : > { %v66_v14 = vpop.permute.xlu0 %65 }
  0xbc   : > { %v68_v19 = vmul.f32 %v66_v14, %v56_v12 }
  0xc3   : > { %v97_v18 = vpop.permute.xlu0 %96 }
  0xc9   : > { %v90_v16 = vpop.f32.mrf.mxu0 }
  0xca   : > { %v91_v17 = vadd.f32 %v90_v16, %v69_v15 }
  0xcc   : > { %v99_v20 = vmul.f32 %v97_v18, %v91_v17 }
  0xce   : > { %v100_v21 = vadd.f32 %v99_v20, %v68_v19 }
  0xd0   : > { %v101_v22 = vmax.f32 %v100_v21, 0.0 }
  0xd2   : > { %v102_v23 = vsub.f32 %v101_v22, %v56_v12  ;;  %113 = vst.msk [vmem:[%s345_s3] sm:$0xff] %vm33_vm0, %v101_v22 }
  0xd4   : > { %v103_v24 = vand.u32 2147483647, %v102_v23 }
  0xd6   : > { %v104_v25 = vsel %vm33_vm0, %v103_v24, -inf }
  0xd7   : > { %105 = vmax.xlane.f32.xlu1 %v104_v25 }
 0x14a   : > { %v106_v26 = vpop.xlane.xlu1 %105 }
 0x14b   : > { %v107_v27 = vrot.slane %v106_v26, 4 }
 0x14d   : > { %v108_v28 = vmax.f32 %v106_v26, %v107_v27 }
 0x14f   : > { %v109_v29 = vrot.slane %v108_v28, 2 }
 0x151   : > { %v110_v31 = vmax.f32 %v108_v28, %v109_v29 }
 0x153   : > { %v111_v32 = vrot.slane %v110_v31, 1 }
 0x155   : > { %v112_v35 = vmax.f32 %v110_v31, %v111_v32 }
 0x157   : > { %vm114_vm2 = vcmp.gt.f32.partialorder %v112_v35, %v55_v33  ;;  %119 = vst.msk [vmem:[#allocation2] sm:$0x1] %vm35_vm1, %v112_v35 }
 0x158   : > { %v117_v36 = vsel %vm114_vm2, %v116_v34, %v54_v7 }
 0x159   : > { %118 = vst.msk [vmem:[#allocation3] sm:$0x1] %vm35_vm1, %v117_v36 }
 0x15a PF: > { %s47_s26 = sadd.s32 1, %s250_s26  }
 0x15b   : > { %p44_p1 = scmp.ge.s32.totalorder %s47_s26, 300  }
 0x15c   :  { %s123_s19 = sld [smem:[#allocation4]] (%p44_p1)  ;;  %s135_s23 = sshll.u32 (%p44_p1), %s346_s4, 4  ;;  %s136_s23 = int_to_ptr.hbm [resolvable:$true] %s135_s23 }
 0x15d   :  { %46 = sbr.rel (!%p44_p1) target bundleno = 16 (0x10), region = 65  ;;  %s146_s0 = sshll.u32 (%p44_p1), %s347_s5, 4  ;;  %s147_s0 = int_to_ptr.hbm [resolvable:$true] %s146_s0 }
 0x15e   :  { %v126_v37 = vld [vmem:[#allocation2] sm:$0x1] (%p44_p1)  ;;  %s257_s27 = smov (%p44_p1), [#allocation10]   ;;  %s258_s26 = smov (%p44_p1), [#allocation9]  }
 0x15f   :  { %127 = vst.msk [vmem:[#allocation10] sm:$0x1] (%p44_p1), %vm35_vm1, %v126_v37  ;;  %s144_s28 = sshll.u32 (%p44_p1), %s257_s27, 4  ;;  %s145_s28 = int_to_ptr.vmem [resolvable:$true] %s144_s28 }
 0x160   :  { %149 = dma.vmem_to_hbm [thread:$0]  (%p44_p1), %s145_s28, 16, %s147_s0, [#allocation6]  }
 0x162   :  { %125 = sst [smem:[#allocation9]] %s123_s19 }
 0x163   :  { %138 = dma.smem_to_hbm %s258_s26, 16, %s136_s23, [#allocation7]  }
 0x164   :  { %244 = dma.done.wait [#allocation7], 16  }
 0x165   :  { %245 = vsyncadd [#allocation7], 4294967280 }
 0x166   :  { %246 = dma.done.wait [#allocation6], 16  }
 0x167   :  { %247 = vsyncadd [#allocation6], 4294967280 }
 0x168   :  { %160 = sfence }
 0x169   :  { %161 = vsyncpa [#allocation6], 1 }
 0x16a   :  { %162 = vsyncpa [#allocation7], 1 }
 0x16b   :  { %163 = vsyncpa [#allocation8], 1 }

</bundles_post_ra>
